<compile_context>
chip_gen: v6e
topology: v6e:2x2x1
jax: 0.10.0
libtpu: 0.0.40
codegen_flags: <defaults>
</compile_context>

<pallas_src>
import jax
import jax.numpy as jnp
from jax.experimental import pallas as pl
from jax.experimental.pallas import tpu as pltpu


LANE = 128
SUBLANE = 8


def _round_up(v, m):
    return ((v + m - 1) // m) * m


def _cdiv(a, b):
    return (a + b - 1) // b


def fcrb_kernel(x_ref, wt_ref, b_ref, o_ref):
    # x_ref:  [tm, Kp]  bf16 row tile of the input (zero-padded K)
    # wt_ref: [Kp, tn]  bf16 BN-folded, transposed Linear weight (column tile)
    # b_ref:  [1,  tn]  f32  BN-folded bias (column tile)
    # o_ref:  [tm, tn]
    y = jnp.dot(x_ref[...], wt_ref[...], preferred_element_type=jnp.float32)
    o_ref[...] = jnp.maximum(y + b_ref[...], 0.0).astype(o_ref.dtype)


def fold_fcrb_params(w, b, gamma, beta, running_mean, running_var, eps=1e-5):
    """Fold eval-mode BatchNorm1d into the Linear params; pad/cast for the
    kernel.  Weights are static: call once (at model load / under jit) and
    reuse the result for every forward call."""
    c_out, c_in = w.shape
    scale = gamma / jnp.sqrt(running_var + eps)            # [C_out]
    shift = beta - running_mean * scale                    # [C_out]
    wt_folded = jnp.transpose(w) * scale[None, :]          # [C_in, C_out]
    b_folded = b * scale + shift                           # [C_out]

    k_pad = _round_up(c_in, LANE)                          # lane-dense MXU feed
    c_pad = _round_up(c_out, LANE)                         # unmasked vst output

    wt_p = wt_folded.astype(jnp.bfloat16)                  # bf16 MXU feed
    if (k_pad - c_in) or (c_pad - c_out):
        wt_p = jnp.pad(wt_p, ((0, k_pad - c_in), (0, c_pad - c_out)))
    b_p = b_folded.astype(jnp.float32)
    if c_pad - c_out:
        b_p = jnp.pad(b_p, ((0, c_pad - c_out),))
    b_p = b_p.reshape(1, c_pad)
    return wt_p, b_p, c_in, c_out


def fcrb_apply(x, wt_p, b_p, c_in, c_out, out_dtype=jnp.float32):
    """Apply the folded FCRB to x: ReLU(x @ W_folded + b_folded)."""
    n = x.shape[0]
    k_pad, c_pad = wt_p.shape

    # ---- Row tiling: minimal N padding, >=2 row tiles for v7x megacore ------
    n_al = _round_up(max(n, SUBLANE), SUBLANE)
    g_rows = 1 if n_al <= SUBLANE else max(2, _cdiv(n_al, 512))
    tm = _round_up(_cdiv(n_al, g_rows), SUBLANE)
    n_pad = g_rows * tm

    # ---- Column tiling: bound resident weight, keep output lane-dense -------
    tn = min(c_pad, 512)
    g_cols = c_pad // tn

    # Cast to bf16 first (halves padded bytes); skip the pad copy if aligned.
    x_p = x.astype(jnp.bfloat16)
    if (n_pad - n) or (k_pad - c_in):
        x_p = jnp.pad(x_p, ((0, n_pad - n), (0, k_pad - c_in)))

    # Single-buffer the weight/bias when their block index is grid-invariant
    # and the block is big enough for the VMEM saving to matter.
    w_kwargs, b_kwargs = {}, {}
    w_block_bytes = k_pad * tn * 2
    if g_cols == 1 and w_block_bytes >= (1 << 20):
        w_kwargs["pipeline_mode"] = pl.Buffered(1)
        b_kwargs["pipeline_mode"] = pl.Buffered(1)
    w_bufs = 1 if w_kwargs else 2

    out_itemsize = jnp.dtype(out_dtype).itemsize
    vmem_est = (2 * tm * k_pad * 2              # x tiles (bf16, double-buffered)
                + w_bufs * w_block_bytes        # weight tile(s) (bf16)
                + w_bufs * SUBLANE * tn * 4     # bias tile(s) (f32, sublane-padded)
                + 2 * tm * tn * out_itemsize)   # output tiles
    vmem_limit = min(max(32 << 20, vmem_est * 3 // 2 + (2 << 20)), 128 << 20)

    out_padded = pl.pallas_call(
        fcrb_kernel,
        out_shape=jax.ShapeDtypeStruct((n_pad, c_pad), out_dtype),
        grid=(g_rows, g_cols),
        in_specs=[
            pl.BlockSpec((tm, k_pad), lambda i, j: (i, 0)),
            pl.BlockSpec((k_pad, tn), lambda i, j: (0, j), **w_kwargs),
            pl.BlockSpec((1, tn), lambda i, j: (0, j), **b_kwargs),
        ],
        out_specs=pl.BlockSpec((tm, tn), lambda i, j: (i, j)),
        compiler_params=pltpu.CompilerParams(
            dimension_semantics=("parallel", "parallel"),
            vmem_limit_bytes=int(vmem_limit)),
    )(x_p, wt_p, b_p)

    if n_pad == n and c_pad == c_out:
        return out_padded
    return out_padded[:n, :c_out]


def fcrb_forward(x, w, b, gamma, beta, running_mean, running_var, eps=1e-5,
                 out_dtype=jnp.float32):
    """x: [N, C_in] float32.  w: [C_out, C_in] (PyTorch Linear layout)."""
    wt_p, b_p, c_in, c_out = fold_fcrb_params(
        w, b, gamma, beta, running_mean, running_var, eps)
    return fcrb_apply(x, wt_p, b_p, c_in, c_out, out_dtype=out_dtype)


if __name__ == "__main__":
    key = jax.random.PRNGKey(0)
    k_x, k_w, k_b = jax.random.split(key, 3)

    # Small shapes consistent with the module: batch=8, in_chan=32, out_chan=64.
    N, C_IN, C_OUT = 8, 32, 64

    x = jax.random.normal(k_x, (N, C_IN), dtype=jnp.float32)

    # Deterministic parameter init (shapes from FCRB.__init__).
    bound = 1.0 / jnp.sqrt(jnp.float32(C_IN))
    w = jax.random.uniform(k_w, (C_OUT, C_IN), minval=-bound, maxval=bound,
                           dtype=jnp.float32)              # Linear.weight
    b = jax.random.uniform(k_b, (C_OUT,), minval=-bound, maxval=bound,
                           dtype=jnp.float32)              # Linear.bias
    gamma = jnp.ones((C_OUT,), jnp.float32)                # BN weight
    beta = jnp.zeros((C_OUT,), jnp.float32)                # BN bias
    running_mean = jnp.zeros((C_OUT,), jnp.float32)
    running_var = jnp.ones((C_OUT,), jnp.float32)

    out = fcrb_forward(x, w, b, gamma, beta, running_mean, running_var)
    out = jax.block_until_ready(out)

    # Reference check in plain JAX (same eval-mode semantics, f32).
    scale = gamma / jnp.sqrt(running_var + 1e-5)
    ref = jnp.maximum((x @ w.T + b) * scale + (beta - running_mean * scale), 0.0)
    assert out.shape == (N, C_OUT)
    # bf16 MXU feed -> ~1e-2 relative deviation vs the f32 reference.
    assert jnp.allclose(out, ref, atol=3e-2, rtol=3e-2), \
        float(jnp.max(jnp.abs(out - ref)))

    print("KERNEL_OK")
</pallas_src>

<mosaic_0001>
module attributes {stable_mosaic.version = 11 : i64} {
  func.func @fcrb_kernel(%arg0: i32, %arg1: i32, %arg2: memref<8x128xbf16, #tpu.memory_space<vmem>>, %arg3: memref<128x128xbf16, #tpu.memory_space<vmem>>, %arg4: memref<1x128xf32, #tpu.memory_space<vmem>>, %arg5: memref<8x128xf32, #tpu.memory_space<vmem>>) attributes {dimension_semantics = [#tpu.dimension_semantics<parallel>, #tpu.dimension_semantics<parallel>], iteration_bounds = array<i64: 1, 1>, scalar_prefetch = 0 : i64, scratch_operands = 0 : i64, tpu.core_type = #tpu.core_type<tc>, window_params = [{transform_indices = @transform_0, window_bounds = array<i64: 8, 128>}, {transform_indices = @transform_1, window_bounds = array<i64: 128, 128>}, {transform_indices = @transform_2, window_bounds = array<i64: 1, 128>}, {transform_indices = @transform_3, window_bounds = array<i64: 8, 128>}]} {
    %c0 = arith.constant 0 : index
    %c0_0 = arith.constant 0 : index
    %0 = vector.load %arg2[%c0, %c0_0] : memref<8x128xbf16, #tpu.memory_space<vmem>>, vector<8x128xbf16>
    %c0_1 = arith.constant 0 : index
    %c0_2 = arith.constant 0 : index
    %1 = vector.load %arg3[%c0_1, %c0_2] : memref<128x128xbf16, #tpu.memory_space<vmem>>, vector<128x128xbf16>
    %cst = arith.constant dense<0.000000e+00> : vector<8x128xf32>
    %2 = tpu.matmul %0, %1, %cst {dimension_numbers = #tpu.dot_dimension_numbers<[1], [0], [0], [1], [0, 0, 1, 1], [], []>} : vector<8x128xbf16>, vector<128x128xbf16>, vector<8x128xf32> -> vector<8x128xf32>
    %c0_3 = arith.constant 0 : index
    %c0_4 = arith.constant 0 : index
    %3 = vector.load %arg4[%c0_3, %c0_4] : memref<1x128xf32, #tpu.memory_space<vmem>>, vector<1x128xf32>
    %4 = vector.broadcast %3 : vector<1x128xf32> to vector<8x128xf32>
    %5 = arith.addf %2, %4 : vector<8x128xf32>
    %cst_5 = arith.constant 0.000000e+00 : f32
    %6 = vector.broadcast %cst_5 : f32 to vector<8x128xf32>
    %7 = arith.maximumf %5, %6 : vector<8x128xf32>
    %c0_6 = arith.constant 0 : index
    %c0_7 = arith.constant 0 : index
    %8 = vector.load %arg5[%c0_6, %c0_7] : memref<8x128xf32, #tpu.memory_space<vmem>>, vector<8x128xf32>
    tpu.vector_store %arg5[%c0_6, %c0_7], %7 {strides = array<i32>} : memref<8x128xf32, #tpu.memory_space<vmem>>, vector<8x128xf32>,
    return
  }
  func.func @transform_0(%arg0: i32, %arg1: i32) -> (i32, i32) {
    %c0_i32 = arith.constant 0 : i32
    %c0_i32_0 = arith.constant 0 : i32
    return %arg0, %c0_i32 : i32, i32
  }
  func.func @transform_1(%arg0: i32, %arg1: i32) -> (i32, i32) {
    %c0_i32 = arith.constant 0 : i32
    %c0_i32_0 = arith.constant 0 : i32
    return %c0_i32, %arg1 : i32, i32
  }
  func.func @transform_2(%arg0: i32, %arg1: i32) -> (i32, i32) {
    %c0_i32 = arith.constant 0 : i32
    %c0_i32_0 = arith.constant 0 : i32
    return %c0_i32, %arg1 : i32, i32
  }
  func.func @transform_3(%arg0: i32, %arg1: i32) -> (i32, i32) {
    %c0_i32 = arith.constant 0 : i32
    return %arg0, %arg1 : i32, i32
  }
}

</mosaic_0001>

<bundles_post_ra>
// kernel: tpu_custom_call.1
= control target key start
LH: loop header
LB: loop body
LE: loop exit
PB: predicated region body
PF: predicated region fallthrough
CT: control target
= control target key end

     0   :  { %8 = vsyncpa [#allocation3], 0  ;;  %s330_s0 = inlined_call_operand.hbm [shape: bf16[8,128], index: 0, kind: input, shape index: {}]   ;;  %s331_s1 = inlined_call_operand.hbm [shape: bf16[128,128], index: 1, kind: input, shape index: {}]   ;;  %s332_s2 = inlined_call_operand.vmem [shape: f32[1,128], index: 2, kind: input, shape index: {}]   ;;  %s333_s3 = inlined_call_operand.hbm [shape: f32[8,128], index: 3, kind: output, shape index: {}]  }
   0x1   :  { %9 = vsyncpa [#allocation6], 0 }
   0x2   :  { %10 = vsyncpa [#allocation4], 0  ;;  %s291_s12 = smov [#allocation2]   ;;  %s292_s14 = smov [#allocation5]  }
   0x3   :  { %s17_s13 = sshll.u32 %s291_s12, 4  ;;  %s26_s15 = sshll.u32 %s292_s14, 4  ;;  %s18_s13 = int_to_ptr.vmem [resolvable:$true] %s17_s13  ;;  %s27_s15 = int_to_ptr.vmem [resolvable:$true] %s26_s15 }
   0x4   :  { %s233_s16 = scalar_lea.vmem %s18_s13, 64  ;;  %p238_p1 = scmp.lt.s32.totalorder %s18_s13, %s18_s13 }
   0x5   :  { %p234_p0 = scmp.ne.s32.totalorder %s18_s13, %s233_s16  ;;  %p239_p2 = scmp.lt.s32.totalorder %s233_s16, %s233_s16 }
   0x7   :  { %p240_p3 = por %p239_p2, %p238_p1 }
   0x9   :  { %p241_p4 = pnand %p240_p3, %p234_p0 }
   0xb   :  { %244 = shalt.err (!%p241_p4)
}
   0xc   :  { %20 = dma.hbm_to_vmem [thread:$0]  %s330_s0, 64, %s18_s13, [#allocation3]  }
   0xd   :  { %s253_s19 = scalar_lea.vmem %s27_s15, 1024  ;;  %p258_p6 = scmp.lt.s32.totalorder %s27_s15, %s27_s15 }
   0xe   :  { %p254_p5 = scmp.ne.s32.totalorder %s27_s15, %s253_s19  ;;  %p259_p7 = scmp.lt.s32.totalorder %s253_s19, %s253_s19 }
  0x10   :  { %p260_p8 = por %p259_p7, %p258_p6 }
  0x12   :  { %p261_p9 = pnand %p260_p8, %p254_p5 }
  0x14   :  { %264 = shalt.err (!%p261_p9)
}
  0x15   :  { %s293_s20 = smov 64   ;;  %s294_s21 = smov 4  }
  0x16   :  { %32 = dma.hbm_to_vmem [thread:$0]  %s331_s1, 1024, %s27_s15, [#allocation6], %s293_s20, %s293_s20, %s294_s21  }
  0x17   :  { %285 = dma.done.wait [#allocation3], 64  }
  0x18   :  { %286 = vsyncadd [#allocation3], 4294967232 }
  0x19   :  { %287 = dma.done.wait [#allocation6], 1024  }
  0x1a   :  { %288 = vsyncadd [#allocation6], 4294966272  ;;  %v295_v0 = vmov 0.0   ;;  %vm296_vm0 = vmmov 0   ;;  %v217_v1 = vld [vmem:[#allocation5 + $0x38] sm:$0xff]   ;;  %v218_v2 = vld [vmem:[#allocation5 + $0x30] sm:$0xff]  }
  0x1b   :  { %190 = vmatprep.subr.bf16.mxu0 %v295_v0  ;;  %206 = vmatprep.mubr.msk.bf16.mxu0 %vm296_vm0, %v295_v0  ;;  %v219_v3 = vld [vmem:[#allocation5 + $0x28] sm:$0xff]   ;;  %v220_v4 = vld [vmem:[#allocation5 + $0x20] sm:$0xff]   ;;  %v221_v5 = vld [vmem:[#allocation5 + $0x18] sm:$0xff]   ;;  %s297_s24 = smov [#allocation7]  }
  0x1c   :  { %191 = vmatpush3.bf16.msra.mxu0 %v217_v1  ;;  %v222_v6 = vld [vmem:[#allocation5 + $0x10] sm:$0xff]   ;;  %v223_v7 = vld [vmem:[#allocation5 + $0x8] sm:$0xff]   ;;  %v224_v8 = vld [vmem:[#allocation5] sm:$0xff]   ;;  %s162_s25 = sshll.u32 %s297_s24, 4  ;;  %s163_s25 = int_to_ptr.vmem [resolvable:$true] %s162_s25 }
  0x1d   :  { %192 = vmatprep.subr.bf16.mxu0 %v295_v0  ;;  %v42_v9 = vld [vmem:[#allocation2] sm:$0xf]  ;;  %s265_s26 = scalar_lea.vmem %s163_s25, 128  ;;  %p270_p11 = scmp.lt.s32.totalorder %s163_s25, %s163_s25 }
  0x1e   :  { %v172_v10 = vld [vmem:[%s332_s2] ss:$0 sm:$0xff]  ;;  %p266_p10 = scmp.ne.s32.totalorder %s163_s25, %s265_s26  ;;  %p271_p12 = scmp.lt.s32.totalorder %s265_s26, %s265_s26 }
  0x20   :  { %193 = vmatpush3.bf16.msra.mxu0 %v218_v2  ;;  %p272_p13 = por %p271_p12, %p270_p11 }
  0x21   :  { %194 = vmatprep.subr.bf16.mxu0 %v295_v0 }
  0x22   :  { %p273_p0 = pnand %p272_p13, %p266_p10 }
  0x24   :  { %195 = vmatpush3.bf16.msra.mxu0 %v219_v3 }
  0x25   :  { %196 = vmatprep.subr.bf16.mxu0 %v295_v0 }
  0x28   :  { %197 = vmatpush3.bf16.msra.mxu0 %v220_v4 }
  0x29   :  { %198 = vmatprep.subr.bf16.mxu0 %v295_v0 }
  0x2c   :  { %199 = vmatpush3.bf16.msra.mxu0 %v221_v5 }
  0x2d   :  { %200 = vmatprep.subr.bf16.mxu0 %v295_v0 }
  0x30   :  { %201 = vmatpush3.bf16.msra.mxu0 %v222_v6 }
  0x31   :  { %202 = vmatprep.subr.bf16.mxu0 %v295_v0 }
  0x34   :  { %203 = vmatpush3.bf16.msra.mxu0 %v223_v7 }
  0x35   :  { %204 = vmatprep.subr.bf16.mxu0 %v295_v0 }
  0x38   :  { %205 = vmatpush3.bf16.msra.mxu0 %v224_v8 }
  0x3b   :  { %207 = vmatmul.mubr.bf16.vlgmr.msra.gmra.mxu0 %v42_v9 }
  0xfb   :  { %v148_v11 = vpop.f32.mrf.mxu0 }
  0xfc   :  { %v149_v12 = vadd.f32 %v172_v10, %v148_v11 }
  0xfd   :  { %v208_v13 = vpop.f32.mrf.mxu0 }
  0xfe   :  { %v154_v14 = vmax.f32 %v149_v12, 0.0 }
  0xff   :  { %v151_v15 = vpop.f32.mrf.mxu0 }
 0x100   :  { %155 = vst [vmem:[#allocation7] sm:$0xff] %v154_v14 }
 0x101   :  { %v209_v16 = vpop.f32.mrf.mxu0 }
 0x102   :  { %276 = shalt.err (!%p273_p0)
}
 0x103   :  { %165 = dma.vmem_to_hbm [thread:$0]  %s163_s25, 128, %s333_s3, [#allocation4]  }
 0x104   :  { %289 = dma.done.wait [#allocation4], 128  }
 0x105   :  { %290 = vsyncadd [#allocation4], 4294967168 }
 0x106   :  { %169 = vsyncpa [#allocation3], 1 }
 0x107   :  { %170 = vsyncpa [#allocation6], 1 }
 0x108   :  { %171 = vsyncpa [#allocation4], 1 }

</bundles_post_ra>
